<compile_context>
chip_gen: v6e
topology: v6e:2x2x1
jax: 0.10.0
libtpu: 0.0.40
codegen_flags: <defaults>
</compile_context>

<pallas_src>
import functools

import jax
import jax.numpy as jnp
from jax.experimental import pallas as pl
from jax.experimental.pallas import tpu as pltpu


def _round_up(x, m):
    return (x + m - 1) // m * m


# ---------------------------------------------------------------------------
# Pallas kernel: K-tiled matmul (MXU) + shift + optional residual + ReLU
# ---------------------------------------------------------------------------
def _conv_bn_act_kernel(*refs, apply_relu, has_residual):
    if has_residual:
        p_ref, w_ref, shift_ref, res_ref, o_ref, acc_ref = refs
    else:
        p_ref, w_ref, shift_ref, o_ref, acc_ref = refs
        res_ref = None

    k = pl.program_id(1)

    @pl.when(k == 0)
    def _():
        acc_ref[...] = jnp.zeros_like(acc_ref)

    acc_ref[...] += jnp.dot(p_ref[...], w_ref[...],
                            preferred_element_type=jnp.float32)

    @pl.when(k == pl.num_programs(1) - 1)
    def _():
        acc = acc_ref[...] + shift_ref[...]            # BN shift (scale folded
        if res_ref is not None:                        # into the weights)
            acc = acc + res_ref[...]                   # residual add (f32)
        if apply_relu:
            acc = jnp.maximum(acc, 0.0)
        o_ref[...] = acc.astype(o_ref.dtype)


def _fused_conv_bn(patches, w_mat, scale, shift, residual=None,
                   apply_relu=True, out_dtype=jnp.float32,
                   compute_dtype=jnp.bfloat16, tm=512, tk=512):
    """Fused conv(matmul)+BN+add+ReLU. patches:(M,K) w_mat:(K,Cout)."""
    M, K = patches.shape
    Cout = w_mat.shape[1]

    # Fold BN scale into the static weights in f32, then cast for the MXU.
    w_f32 = w_mat.astype(jnp.float32) * scale.reshape(1, Cout)

    # Lane-dense padding of K and Cout; adaptive M tile.
    Cpad = _round_up(Cout, 128)
    tm = _round_up(tm, 128)
    tk = _round_up(tk, 128)
    Kr = _round_up(K, 128)
    if Kr <= tk:
        tk_eff, Kpad = Kr, Kr
    else:
        tk_eff, Kpad = tk, _round_up(K, tk)
    Mr = _round_up(M, 128)
    tm_eff = min(tm, Mr)
    Mpad = _round_up(M, tm_eff)

    patches = patches.astype(compute_dtype)
    if Mpad != M or Kpad != K:
        patches = jnp.pad(patches, ((0, Mpad - M), (0, Kpad - K)))
    w_c = jnp.pad(w_f32, ((0, Kpad - K), (0, Cpad - Cout))).astype(compute_dtype)
    shift_p = jnp.pad(shift.reshape(1, Cout).astype(jnp.float32),
                      ((0, 0), (0, Cpad - Cout)))

    has_res = residual is not None
    args = [patches, w_c, shift_p]
    in_specs = [
        pl.BlockSpec((tm_eff, tk_eff), lambda i, k: (i, k)),   # patches tile
        pl.BlockSpec((tk_eff, Cpad), lambda i, k: (k, 0)),     # weight K-slab
        pl.BlockSpec((1, Cpad), lambda i, k: (0, 0)),          # bn shift
    ]
    if has_res:
        res = residual.astype(jnp.float32)
        res = jnp.pad(res, ((0, Mpad - res.shape[0]), (0, Cpad - Cout)))
        args.append(res)
        in_specs.append(pl.BlockSpec((tm_eff, Cpad), lambda i, k: (i, 0)))

    out = pl.pallas_call(
        functools.partial(_conv_bn_act_kernel,
                          apply_relu=apply_relu, has_residual=has_res),
        out_shape=jax.ShapeDtypeStruct((Mpad, Cpad), out_dtype),
        grid_spec=pltpu.PrefetchScalarGridSpec(
            num_scalar_prefetch=0,
            grid=(Mpad // tm_eff, Kpad // tk_eff),
            in_specs=in_specs,
            out_specs=pl.BlockSpec((tm_eff, Cpad), lambda i, k: (i, 0)),
            scratch_shapes=[pltpu.VMEM((tm_eff, Cpad), jnp.float32)],
        ),
        compiler_params=pltpu.CompilerParams(
            dimension_semantics=("parallel", "arbitrary"),
            vmem_limit_bytes=48 * 1024 * 1024),
    )(*args)
    return out[:M, :Cout]


# ---------------------------------------------------------------------------
# Plain-JAX glue: im2col patch extraction, weight/BN reshaping
# ---------------------------------------------------------------------------
def _im2col(x_nhwc, ksize, stride, padding):
    B, H, W, C = x_nhwc.shape
    xp = jnp.pad(x_nhwc, ((0, 0), (padding, padding), (padding, padding), (0, 0)))
    Ho = (H + 2 * padding - ksize) // stride + 1
    Wo = (W + 2 * padding - ksize) // stride + 1
    cols = []
    for kh in range(ksize):
        for kw in range(ksize):
            patch = xp[:,
                       kh:kh + stride * (Ho - 1) + 1:stride,
                       kw:kw + stride * (Wo - 1) + 1:stride, :]
            cols.append(patch)
    patches = jnp.concatenate(cols, axis=-1)          # (B, Ho, Wo, k*k*C)
    return patches.reshape(B * Ho * Wo, ksize * ksize * C), (B, Ho, Wo)


def _conv_weight_to_mat(w_oihw):
    # (Cout, Cin, KH, KW) -> (KH*KW*Cin, Cout)  matching im2col column order
    Cout, Cin, KH, KW = w_oihw.shape
    return jnp.transpose(w_oihw, (2, 3, 1, 0)).reshape(KH * KW * Cin, Cout)


def _bn_scale_shift(gamma, beta, mean, var, eps=1e-5):
    scale = gamma / jnp.sqrt(var + eps)
    shift = beta - mean * scale
    return scale.reshape(1, -1), shift.reshape(1, -1)


# ---------------------------------------------------------------------------
# BasicBlock forward (NCHW in / NCHW out, like PyTorch)
# ---------------------------------------------------------------------------
def basic_block_forward(x_nchw, params, stride, compute_dtype=jnp.bfloat16):
    x = jnp.transpose(x_nchw, (0, 2, 3, 1))            # NCHW -> NHWC (f32)
    B, H, W, Cin = x.shape
    Cout = params["w1"].shape[0]
    x_c = x.astype(compute_dtype)                       # single cast for both convs

    # conv1 (3x3, stride, pad=1) + bn1 + relu  -> stored in compute dtype
    s1, b1 = _bn_scale_shift(params["bn1_gamma"], params["bn1_beta"],
                             params["bn1_mean"], params["bn1_var"])
    p1, (B_, Ho, Wo) = _im2col(x_c, 3, stride, 1)
    y1 = _fused_conv_bn(p1, _conv_weight_to_mat(params["w1"]), s1, b1,
                        residual=None, apply_relu=True,
                        out_dtype=compute_dtype, compute_dtype=compute_dtype)

    # identity / downsample path (1x1 conv, stride) + bn  (no relu), kept f32
    if params.get("wd") is not None:
        sd, bd = _bn_scale_shift(params["bnd_gamma"], params["bnd_beta"],
                                 params["bnd_mean"], params["bnd_var"])
        pd, _ = _im2col(x_c, 1, stride, 0)
        identity = _fused_conv_bn(pd, _conv_weight_to_mat(params["wd"]), sd, bd,
                                  residual=None, apply_relu=False,
                                  out_dtype=jnp.float32,
                                  compute_dtype=compute_dtype)
    else:
        assert stride == 1 and Cin == Cout, "identity path needs stride==1, Cin==Cout"
        identity = x.reshape(B * H * W, Cin)            # full-precision residual

    # conv2 (3x3, stride 1, pad=1) + bn2 + residual add + relu
    s2, b2 = _bn_scale_shift(params["bn2_gamma"], params["bn2_beta"],
                             params["bn2_mean"], params["bn2_var"])
    p2, _ = _im2col(y1.reshape(B_, Ho, Wo, Cout), 3, 1, 1)
    y2 = _fused_conv_bn(p2, _conv_weight_to_mat(params["w2"]), s2, b2,
                        residual=identity, apply_relu=True,
                        out_dtype=jnp.float32, compute_dtype=compute_dtype)

    out = y2.reshape(B_, Ho, Wo, Cout)
    return jnp.transpose(out, (0, 3, 1, 2))             # NHWC -> NCHW


# ---------------------------------------------------------------------------
# Deterministic parameter init (kaiming-normal fan_out, like the module)
# ---------------------------------------------------------------------------
def init_params(key, in_channels, out_channels, stride):
    ks = jax.random.split(key, 16)

    def kaiming(k, cout, cin, ksize):
        fan_out = cout * ksize * ksize
        std = (2.0 / fan_out) ** 0.5
        return jax.random.normal(k, (cout, cin, ksize, ksize), jnp.float32) * std

    def bn(k, c):
        k1, k2, k3, k4 = jax.random.split(k, 4)
        return dict(
            gamma=jax.random.uniform(k1, (c,), jnp.float32, 0.5, 1.5),
            beta=jax.random.normal(k2, (c,), jnp.float32) * 0.1,
            mean=jax.random.normal(k3, (c,), jnp.float32) * 0.1,
            var=jax.random.uniform(k4, (c,), jnp.float32, 0.5, 1.5),
        )

    p = {}
    p["w1"] = kaiming(ks[0], out_channels, in_channels, 3)
    p["w2"] = kaiming(ks[1], out_channels, out_channels, 3)
    b1 = bn(ks[2], out_channels)
    b2 = bn(ks[3], out_channels)
    p.update({f"bn1_{k}": v for k, v in b1.items()})
    p.update({f"bn2_{k}": v for k, v in b2.items()})
    if stride != 1 or in_channels != out_channels:
        p["wd"] = kaiming(ks[4], out_channels, in_channels, 1)
        bd = bn(ks[5], out_channels)
        p.update({f"bnd_{k}": v for k, v in bd.items()})
    else:
        p["wd"] = None
    return p


# ---------------------------------------------------------------------------
# References
# ---------------------------------------------------------------------------
def _conv_ref(x_nhwc, w_oihw, stride, padding, preferred=None):
    w_hwio = jnp.transpose(w_oihw, (2, 3, 1, 0))
    return jax.lax.conv_general_dilated(
        x_nhwc, w_hwio.astype(x_nhwc.dtype), (stride, stride),
        [(padding, padding), (padding, padding)],
        dimension_numbers=("NHWC", "HWIO", "NHWC"),
        preferred_element_type=preferred)


def _bn_ref(x, g, b, m, v, eps=1e-5):
    return g * (x - m) / jnp.sqrt(v + eps) + b


def reference_forward(x_nchw, p, stride):
    """Classic f32 conv->BN->ReLU formulation (PyTorch inference semantics)."""
    x = jnp.transpose(x_nchw, (0, 2, 3, 1))
    out = _conv_ref(x, p["w1"], stride, 1)
    out = _bn_ref(out, p["bn1_gamma"], p["bn1_beta"], p["bn1_mean"], p["bn1_var"])
    out = jnp.maximum(out, 0.0)
    out = _conv_ref(out, p["w2"], 1, 1)
    out = _bn_ref(out, p["bn2_gamma"], p["bn2_beta"], p["bn2_mean"], p["bn2_var"])
    if p.get("wd") is not None:
        idn = _conv_ref(x, p["wd"], stride, 0)
        idn = _bn_ref(idn, p["bnd_gamma"], p["bnd_beta"], p["bnd_mean"], p["bnd_var"])
    else:
        idn = x
    out = jnp.maximum(out + idn, 0.0)
    return jnp.transpose(out, (0, 3, 1, 2))


def reference_forward_matched(x_nchw, p, stride, conv_dtype):
    """Precision-matched reference: BN scale folded into weights in f32, conv
    operands cast to conv_dtype, f32 accumulation, f32 epilogue (mirrors the
    Pallas kernel's math, only accumulation order differs)."""
    x = jnp.transpose(x_nchw, (0, 2, 3, 1))
    x_c = x.astype(conv_dtype)

    def conv_scaled(inp, w_oihw, g, b, m, v, stride, pad):
        scale, shift = _bn_scale_shift(g, b, m, v)
        w_hwio = jnp.transpose(w_oihw, (2, 3, 1, 0)).astype(jnp.float32) * scale[0]
        out = jax.lax.conv_general_dilated(
            inp, w_hwio.astype(conv_dtype), (stride, stride),
            [(pad, pad), (pad, pad)],
            dimension_numbers=("NHWC", "HWIO", "NHWC"),
            preferred_element_type=jnp.float32)
        return out + shift[0]

    y1 = jnp.maximum(conv_scaled(x_c, p["w1"], p["bn1_gamma"], p["bn1_beta"],
                                 p["bn1_mean"], p["bn1_var"], stride, 1), 0.0)
    y1_c = y1.astype(conv_dtype)
    out = conv_scaled(y1_c, p["w2"], p["bn2_gamma"], p["bn2_beta"],
                      p["bn2_mean"], p["bn2_var"], 1, 1)
    if p.get("wd") is not None:
        idn = conv_scaled(x_c, p["wd"], p["bnd_gamma"], p["bnd_beta"],
                          p["bnd_mean"], p["bnd_var"], stride, 0)
    else:
        idn = x
    out = jnp.maximum(out + idn, 0.0)
    return jnp.transpose(out, (0, 3, 1, 2))


if __name__ == "__main__":
    key = jax.random.PRNGKey(0)

    configs = [
        # (B, Cin, Cout, H, W, stride)
        (2, 4, 8, 16, 16, 2),   # downsample (1x1 conv) residual path
        (2, 8, 8, 16, 16, 1),   # identity residual path
    ]
    for (B, Cin, Cout, H, W, stride) in configs:
        kx, kp, key = jax.random.split(key, 3)
        x = jax.random.normal(kx, (B, Cin, H, W), jnp.float32)
        params = init_params(kp, Cin, Cout, stride)

        # f32 compute path vs classic (PyTorch-semantics) reference
        out_f32 = jax.block_until_ready(
            basic_block_forward(x, params, stride, compute_dtype=jnp.float32))
        ref_f32 = jax.block_until_ready(reference_forward(x, params, stride))
        assert out_f32.shape == ref_f32.shape, (out_f32.shape, ref_f32.shape)
        assert jnp.allclose(out_f32, ref_f32, rtol=1e-4, atol=1e-4), float(
            jnp.max(jnp.abs(out_f32 - ref_f32)))

        # bf16 MXU path vs precision-matched reference
        out_bf = jax.block_until_ready(
            basic_block_forward(x, params, stride, compute_dtype=jnp.bfloat16))
        ref_bf = jax.block_until_ready(
            reference_forward_matched(x, params, stride, jnp.bfloat16))
        assert out_bf.shape == ref_bf.shape, (out_bf.shape, ref_bf.shape)
        assert jnp.allclose(out_bf, ref_bf, rtol=1e-2, atol=1e-2), float(
            jnp.max(jnp.abs(out_bf - ref_bf)))

    print("KERNEL_OK")
</pallas_src>

<mosaic_0001>
module attributes {stable_mosaic.version = 11 : i64} {
  func.func @_conv_bn_act_kernel(%arg0: i32, %arg1: i32, %arg2: memref<128x128xf32, #tpu.memory_space<vmem>>, %arg3: memref<128x128xf32, #tpu.memory_space<vmem>>, %arg4: memref<1x128xf32, #tpu.memory_space<vmem>>, %arg5: memref<128x128xf32, #tpu.memory_space<vmem>>, %arg6: memref<128x128xf32, #tpu.memory_space<vmem>>) attributes {dimension_semantics = [#tpu.dimension_semantics<parallel>, #tpu.dimension_semantics<arbitrary>], iteration_bounds = array<i64: 1, 1>, scalar_prefetch = 0 : i64, scratch_operands = 1 : i64, tpu.core_type = #tpu.core_type<tc>, window_params = [{transform_indices = @transform_0, window_bounds = array<i64: 128, 128>}, {transform_indices = @transform_1, window_bounds = array<i64: 128, 128>}, {pipeline_mode = #tpu.pipeline_mode<synchronous>, transform_indices = @transform_2, window_bounds = array<i64: 1, 128>}, {transform_indices = @transform_3, window_bounds = array<i64: 128, 128>}]} {
    %c0_i32 = arith.constant 0 : i32
    %0 = arith.cmpi eq, %arg1, %c0_i32 : i32
    %1 = arith.extui %0 : i1 to i32
    %c0_i32_0 = arith.constant 0 : i32
    %2 = arith.cmpi ne, %1, %c0_i32_0 : i32
    scf.if %2 {
      %cst_10 = arith.constant 0.000000e+00 : f32
      %12 = vector.broadcast %cst_10 : f32 to vector<128x128xf32>
      %c0_11 = arith.constant 0 : index
      %c0_12 = arith.constant 0 : index
      %13 = vector.load %arg6[%c0_11, %c0_12] : memref<128x128xf32, #tpu.memory_space<vmem>>, vector<128x128xf32>
      tpu.vector_store %arg6[%c0_11, %c0_12], %12 {strides = array<i32>} : memref<128x128xf32, #tpu.memory_space<vmem>>, vector<128x128xf32>,
    } else {
    }
    %c0 = arith.constant 0 : index
    %c0_1 = arith.constant 0 : index
    %3 = vector.load %arg6[%c0, %c0_1] : memref<128x128xf32, #tpu.memory_space<vmem>>, vector<128x128xf32>
    %c0_2 = arith.constant 0 : index
    %c0_3 = arith.constant 0 : index
    %4 = vector.load %arg2[%c0_2, %c0_3] : memref<128x128xf32, #tpu.memory_space<vmem>>, vector<128x128xf32>
    %c0_4 = arith.constant 0 : index
    %c0_5 = arith.constant 0 : index
    %5 = vector.load %arg3[%c0_4, %c0_5] : memref<128x128xf32, #tpu.memory_space<vmem>>, vector<128x128xf32>
    %cst = arith.constant dense<0.000000e+00> : vector<128x128xf32>
    %6 = tpu.matmul %4, %5, %cst {dimension_numbers = #tpu.dot_dimension_numbers<[1], [0], [0], [1], [0, 0, 1, 1], [], []>} : vector<128x128xf32>, vector<128x128xf32>, vector<128x128xf32> -> vector<128x128xf32>
    %7 = arith.addf %3, %6 : vector<128x128xf32>
    %c0_6 = arith.constant 0 : index
    %c0_7 = arith.constant 0 : index
    %8 = vector.load %arg6[%c0_6, %c0_7] : memref<128x128xf32, #tpu.memory_space<vmem>>, vector<128x128xf32>
    tpu.vector_store %arg6[%c0_6, %c0_7], %7 {strides = array<i32>} : memref<128x128xf32, #tpu.memory_space<vmem>>, vector<128x128xf32>,
    %c0_i32_8 = arith.constant 0 : i32
    %9 = arith.cmpi eq, %arg1, %c0_i32_8 : i32
    %10 = arith.extui %9 : i1 to i32
    %c0_i32_9 = arith.constant 0 : i32
    %11 = arith.cmpi ne, %10, %c0_i32_9 : i32
    scf.if %11 {
      %c0_10 = arith.constant 0 : index
      %c0_11 = arith.constant 0 : index
      %12 = vector.load %arg6[%c0_10, %c0_11] : memref<128x128xf32, #tpu.memory_space<vmem>>, vector<128x128xf32>
      %c0_12 = arith.constant 0 : index
      %c0_13 = arith.constant 0 : index
      %13 = vector.load %arg4[%c0_12, %c0_13] : memref<1x128xf32, #tpu.memory_space<vmem>>, vector<1x128xf32>
      %14 = vector.broadcast %13 : vector<1x128xf32> to vector<128x128xf32>
      %15 = arith.addf %12, %14 : vector<128x128xf32>
      %cst_14 = arith.constant 0.000000e+00 : f32
      %16 = vector.broadcast %cst_14 : f32 to vector<128x128xf32>
      %17 = arith.maximumf %15, %16 : vector<128x128xf32>
      %c0_15 = arith.constant 0 : index
      %c0_16 = arith.constant 0 : index
      %18 = vector.load %arg5[%c0_15, %c0_16] : memref<128x128xf32, #tpu.memory_space<vmem>>, vector<128x128xf32>
      tpu.vector_store %arg5[%c0_15, %c0_16], %17 {strides = array<i32>} : memref<128x128xf32, #tpu.memory_space<vmem>>, vector<128x128xf32>,
    } else {
    }
    return
  }
  func.func @transform_0(%arg0: i32, %arg1: i32) -> (i32, i32) {
    %c0_i32 = arith.constant 0 : i32
    return %arg0, %arg1 : i32, i32
  }
  func.func @transform_1(%arg0: i32, %arg1: i32) -> (i32, i32) {
    %c0_i32 = arith.constant 0 : i32
    %c0_i32_0 = arith.constant 0 : i32
    return %arg1, %c0_i32 : i32, i32
  }
  func.func @transform_2(%arg0: i32, %arg1: i32) -> (i32, i32) {
    %c0_i32 = arith.constant 0 : i32
    %c0_i32_0 = arith.constant 0 : i32
    %c0_i32_1 = arith.constant 0 : i32
    return %c0_i32, %c0_i32_0 : i32, i32
  }
  func.func @transform_3(%arg0: i32, %arg1: i32) -> (i32, i32) {
    %c0_i32 = arith.constant 0 : i32
    %c0_i32_0 = arith.constant 0 : i32
    return %arg0, %c0_i32 : i32, i32
  }
}

</mosaic_0001>

<bundles_post_ra>
// kernel: tpu_custom_call.1
= control target key start
LH: loop header
LB: loop body
LE: loop exit
PB: predicated region body
PF: predicated region fallthrough
CT: control target
= control target key end

     0   :  { %8 = vsyncpa [#allocation4], 0  ;;  %s618_s0 = inlined_call_operand.hbm [shape: f32[128,128], index: 0, kind: input, shape index: {}]   ;;  %s619_s1 = inlined_call_operand.hbm [shape: f32[128,128], index: 1, kind: input, shape index: {}]   ;;  %s620_s2 = inlined_call_operand.vmem [shape: f32[1,128], index: 2, kind: input, shape index: {}]   ;;  %s621_s3 = inlined_call_operand.hbm [shape: f32[128,128], index: 3, kind: output, shape index: {}]  }
   0x1   :  { %9 = vsyncpa [#allocation7], 0 }
   0x2   :  { %10 = vsyncpa [#allocation5], 0  ;;  %s572_s12 = smov [#allocation3]  }
   0x3   :  { %s16_s13 = sshll.u32 %s572_s12, 4  ;;  %s17_s13 = int_to_ptr.vmem [resolvable:$true] %s16_s13 }
   0x4   :  { %s514_s14 = scalar_lea.vmem %s17_s13, 2048  ;;  %p519_p1 = scmp.lt.s32.totalorder %s17_s13, %s17_s13 }
   0x5   :  { %p515_p0 = scmp.ne.s32.totalorder %s17_s13, %s514_s14  ;;  %p520_p2 = scmp.lt.s32.totalorder %s514_s14, %s514_s14 }
   0x7   :  { %p521_p3 = por %p520_p2, %p519_p1 }
   0x9   :  { %p522_p4 = pnand %p521_p3, %p515_p0 }
   0xb   :  { %525 = shalt.err (!%p522_p4)
}
   0xc   :  { %s573_s15 = smov 128   ;;  %s574_s16 = smov 8  }
   0xd   :  { %22 = dma.hbm_to_vmem [thread:$0]  %s618_s0, 2048, %s17_s13, [#allocation4], %s573_s15, %s573_s15, %s574_s16  }
   0xe   :  { %s575_s19 = smov [#allocation6]  }
   0xf   :  { %s28_s20 = sshll.u32 %s575_s19, 4  ;;  %s29_s20 = int_to_ptr.vmem [resolvable:$true] %s28_s20 }
  0x10   :  { %s534_s21 = scalar_lea.vmem %s29_s20, 2048  ;;  %p539_p6 = scmp.lt.s32.totalorder %s29_s20, %s29_s20 }
  0x11   :  { %p535_p5 = scmp.ne.s32.totalorder %s29_s20, %s534_s21  ;;  %p540_p7 = scmp.lt.s32.totalorder %s534_s21, %s534_s21 }
  0x13   :  { %p541_p8 = por %p540_p7, %p539_p6 }
  0x15   :  { %p542_p9 = pnand %p541_p8, %p535_p5 }
  0x17   :  { %545 = shalt.err (!%p542_p9)
}
  0x18   :  { %34 = dma.hbm_to_vmem [thread:$0]  %s619_s1, 2048, %s29_s20, [#allocation7], %s573_s15, %s573_s15, %s574_s16  }
  0x19   :  { %566 = dma.done.wait [#allocation4], 2048  }
  0x1a   :  { %567 = vsyncadd [#allocation4], 4294965248 }
  0x1b   :  { %568 = dma.done.wait [#allocation7], 2048  }
  0x1c   :  { %569 = vsyncadd [#allocation7], 4294965248  ;;  %v110_v0 = vld [vmem:[#allocation6 + $0x78] sm:$0xff]  ;;  %v109_v1 = vld [vmem:[#allocation6 + $0x70] sm:$0xff] }
  0x1d   :  { %413 = vmatprep.subr.mxu0 %v110_v0  ;;  %469 = vmatprep.subr.mxu1 %v110_v0  ;;  %v108_v2 = vld [vmem:[#allocation6 + $0x68] sm:$0xff]  ;;  %v107_v3 = vld [vmem:[#allocation6 + $0x60] sm:$0xff]  ;;  %v106_v4 = vld [vmem:[#allocation6 + $0x58] sm:$0xff] }
  0x1e   :  { %414 = vmatpush3.msra.mxu0 %v110_v0  ;;  %485 = vmatpush3.msra.mxu1 %v110_v0  ;;  %v105_v5 = vld [vmem:[#allocation6 + $0x50] sm:$0xff]  ;;  %v104_v6 = vld [vmem:[#allocation6 + $0x48] sm:$0xff]  ;;  %v103_v7 = vld [vmem:[#allocation6 + $0x40] sm:$0xff] }
  0x1f   :  { %415 = vmatprep.subr.mxu0 %v109_v1  ;;  %470 = vmatprep.subr.mxu1 %v109_v1  ;;  %v102_v8 = vld [vmem:[#allocation6 + $0x38] sm:$0xff]  ;;  %v101_v9 = vld [vmem:[#allocation6 + $0x30] sm:$0xff]  ;;  %v100_v10 = vld [vmem:[#allocation6 + $0x28] sm:$0xff] }
  0x20   :  { %416 = vmatpush3.msra.mxu0 %v109_v1  ;;  %486 = vmatpush3.msra.mxu1 %v109_v1  ;;  %v99_v11 = vld [vmem:[#allocation6 + $0x20] sm:$0xff]  ;;  %v98_v12 = vld [vmem:[#allocation6 + $0x18] sm:$0xff]  ;;  %v97_v13 = vld [vmem:[#allocation6 + $0x10] sm:$0xff] }
  0x21   :  { %417 = vmatprep.subr.mxu0 %v108_v2  ;;  %471 = vmatprep.subr.mxu1 %v108_v2  ;;  %v96_v14 = vld [vmem:[#allocation6 + $0x8] sm:$0xff]  ;;  %v95_v15 = vld [vmem:[#allocation6] sm:$0xff]  ;;  %v81_v20 = vld [vmem:[#allocation3 + $0x10] sm:$0xff] }
  0x22   :  { %418 = vmatpush3.msra.mxu0 %v108_v2  ;;  %487 = vmatpush3.msra.mxu1 %v108_v2  ;;  %v79_v16 = vld [vmem:[#allocation3] sm:$0xff]  ;;  %v80_v18 = vld [vmem:[#allocation3 + $0x8] sm:$0xff]  ;;  %v89_v21 = vld [vmem:[#allocation3 + $0x50] sm:$0xff] }
  0x23   :  { %419 = vmatprep.subr.mxu0 %v107_v3  ;;  %472 = vmatprep.subr.mxu1 %v107_v3  ;;  %v87_v17 = vld [vmem:[#allocation3 + $0x40] sm:$0xff]  ;;  %v88_v19 = vld [vmem:[#allocation3 + $0x48] sm:$0xff]  ;;  %v82_v22 = vld [vmem:[#allocation3 + $0x18] sm:$0xff] }
  0x24   :  { %420 = vmatpush3.msra.mxu0 %v107_v3  ;;  %488 = vmatpush3.msra.mxu1 %v107_v3  ;;  %v90_v23 = vld [vmem:[#allocation3 + $0x58] sm:$0xff]  ;;  %v83_v24 = vld [vmem:[#allocation3 + $0x20] sm:$0xff]  ;;  %v84_v26 = vld [vmem:[#allocation3 + $0x28] sm:$0xff] }
  0x25   :  { %421 = vmatprep.subr.mxu0 %v106_v4  ;;  %473 = vmatprep.subr.mxu1 %v106_v4  ;;  %v91_v25 = vld [vmem:[#allocation3 + $0x60] sm:$0xff]  ;;  %v92_v27 = vld [vmem:[#allocation3 + $0x68] sm:$0xff]  ;;  %v85_v28 = vld [vmem:[#allocation3 + $0x30] sm:$0xff] }
  0x26   :  { %422 = vmatpush3.msra.mxu0 %v106_v4  ;;  %489 = vmatpush3.msra.mxu1 %v106_v4  ;;  %v93_v29 = vld [vmem:[#allocation3 + $0x70] sm:$0xff]  ;;  %v86_v30 = vld [vmem:[#allocation3 + $0x38] sm:$0xff]  ;;  %v380_v32 = vld [vmem:[%s620_s2] ss:$0 sm:$0xff]  ;;  %s576_s2 = smov [#allocation8]  }
  0x27   :  { %423 = vmatprep.subr.mxu0 %v105_v5  ;;  %474 = vmatprep.subr.mxu1 %v105_v5  ;;  %v94_v31 = vld [vmem:[#allocation3 + $0x78] sm:$0xff]  ;;  %s367_s24 = sshll.u32 %s576_s2, 4  ;;  %s368_s24 = int_to_ptr.vmem [resolvable:$true] %s367_s24 }
  0x28   :  { %424 = vmatpush3.msra.mxu0 %v105_v5  ;;  %490 = vmatpush3.msra.mxu1 %v105_v5  ;;  %s546_s25 = scalar_lea.vmem %s368_s24, 2048  ;;  %p551_p11 = scmp.lt.s32.totalorder %s368_s24, %s368_s24 }
  0x29   :  { %425 = vmatprep.subr.mxu0 %v104_v6  ;;  %475 = vmatprep.subr.mxu1 %v104_v6  ;;  %p547_p10 = scmp.ne.s32.totalorder %s368_s24, %s546_s25  ;;  %p552_p12 = scmp.lt.s32.totalorder %s546_s25, %s546_s25 }
  0x2a   :  { %426 = vmatpush3.msra.mxu0 %v104_v6  ;;  %491 = vmatpush3.msra.mxu1 %v104_v6 }
  0x2b   :  { %427 = vmatprep.subr.mxu0 %v103_v7  ;;  %476 = vmatprep.subr.mxu1 %v103_v7  ;;  %p553_p13 = por %p552_p12, %p551_p11 }
  0x2c   :  { %428 = vmatpush3.msra.mxu0 %v103_v7  ;;  %492 = vmatpush3.msra.mxu1 %v103_v7 }
  0x2d   :  { %429 = vmatprep.subr.mxu0 %v102_v8  ;;  %477 = vmatprep.subr.mxu1 %v102_v8  ;;  %p554_p0 = pnand %p553_p13, %p547_p10 }
  0x2e   :  { %430 = vmatpush3.msra.mxu0 %v102_v8  ;;  %493 = vmatpush3.msra.mxu1 %v102_v8 }
  0x2f   :  { %431 = vmatprep.subr.mxu0 %v101_v9  ;;  %478 = vmatprep.subr.mxu1 %v101_v9 }
  0x30   :  { %432 = vmatpush3.msra.mxu0 %v101_v9  ;;  %494 = vmatpush3.msra.mxu1 %v101_v9 }
  0x31   :  { %433 = vmatprep.subr.mxu0 %v100_v10  ;;  %479 = vmatprep.subr.mxu1 %v100_v10 }
  0x32   :  { %434 = vmatpush3.msra.mxu0 %v100_v10  ;;  %495 = vmatpush3.msra.mxu1 %v100_v10 }
  0x33   :  { %435 = vmatprep.subr.mxu0 %v99_v11  ;;  %480 = vmatprep.subr.mxu1 %v99_v11 }
  0x34   :  { %436 = vmatpush3.msra.mxu0 %v99_v11  ;;  %496 = vmatpush3.msra.mxu1 %v99_v11 }
  0x35   :  { %437 = vmatprep.subr.mxu0 %v98_v12  ;;  %481 = vmatprep.subr.mxu1 %v98_v12 }
  0x36   :  { %438 = vmatpush3.msra.mxu0 %v98_v12  ;;  %497 = vmatpush3.msra.mxu1 %v98_v12 }
  0x37   :  { %439 = vmatprep.subr.mxu0 %v97_v13  ;;  %482 = vmatprep.subr.mxu1 %v97_v13 }
  0x38   :  { %440 = vmatpush3.msra.mxu0 %v97_v13  ;;  %498 = vmatpush3.msra.mxu1 %v97_v13 }
  0x39   :  { %441 = vmatprep.subr.mxu0 %v96_v14  ;;  %483 = vmatprep.subr.mxu1 %v96_v14 }
  0x3a   :  { %442 = vmatpush3.msra.mxu0 %v96_v14  ;;  %499 = vmatpush3.msra.mxu1 %v96_v14 }
  0x3b   :  { %443 = vmatprep.subr.mxu0 %v95_v15  ;;  %484 = vmatprep.subr.mxu1 %v95_v15 }
  0x3c   :  { %444 = vmatpush3.msra.mxu0 %v95_v15  ;;  %500 = vmatpush3.msra.mxu1 %v95_v15 }
  0x3d   :  { %445 = vmatprep.mubr.f32.mxu0 %v79_v16  ;;  %457 = vmatprep.mubr.f32.mxu1 %v87_v17 }
  0x3e   :  { %446 = vmatmul.mubr.f32.vlgmr.msra.gmra.mxu0 %v80_v18  ;;  %458 = vmatmul.mubr.f32.vlgmr.msra.gmra.mxu1 %v88_v19 }
  0x3f   :  { %448 = vmatprep.mubr.f32.mxu0 %v81_v20  ;;  %460 = vmatprep.mubr.f32.mxu1 %v89_v21 }
  0x42   :  { %449 = vmatmul.mubr.f32.gmra.mxu0 %v82_v22  ;;  %461 = vmatmul.mubr.f32.gmra.mxu1 %v90_v23 }
  0x43   :  { %451 = vmatprep.mubr.f32.mxu0 %v83_v24  ;;  %463 = vmatprep.mubr.f32.mxu1 %v91_v25 }
  0x46   :  { %452 = vmatmul.mubr.f32.gmra.mxu0 %v84_v26  ;;  %464 = vmatmul.mubr.f32.gmra.mxu1 %v92_v27 }
  0x47   :  { %454 = vmatprep.mubr.f32.mxu0 %v85_v28  ;;  %466 = vmatprep.mubr.f32.mxu1 %v93_v29 }
  0x4a   :  { %455 = vmatmul.mubr.f32.gmra.mxu0 %v86_v30  ;;  %467 = vmatmul.mubr.f32.gmra.mxu1 %v94_v31 }
  0xfe   :  { %v447_v33 = vpop.f32.mrf.mxu0  ;;  %v459_v34 = vpop.f32.mrf.mxu1 }
  0xff   :  { %v315_v35 = vadd.f32 %v447_v33, %v380_v32  ;;  %v323_v36 = vadd.f32 %v459_v34, %v380_v32 }
 0x100   :  { %v177_v37 = vpop.f32.mrf.mxu0  ;;  %v217_v38 = vpop.f32.mrf.mxu1 }
 0x101   :  { %v331_v39 = vmax.f32 %v315_v35, 0.0  ;;  %v339_v40 = vmax.f32 %v323_v36, 0.0  ;;  %v314_v41 = vadd.f32 %v380_v32, %v177_v37  ;;  %v322_v42 = vadd.f32 %v380_v32, %v217_v38 }
 0x102   :  { %v450_v43 = vpop.f32.mrf.mxu0  ;;  %v462_v44 = vpop.f32.mrf.mxu1 }
 0x103   :  { %347 = vst [vmem:[#allocation8 + $0x8] sm:$0xff] %v331_v39  ;;  %355 = vst [vmem:[#allocation8 + $0x48] sm:$0xff] %v339_v40  ;;  %v330_v45 = vmax.f32 %v314_v41, 0.0  ;;  %v338_v46 = vmax.f32 %v322_v42, 0.0  ;;  %v317_v47 = vadd.f32 %v450_v43, %v380_v32  ;;  %v325_v48 = vadd.f32 %v462_v44, %v380_v32 }
 0x104   :  { %v187_v49 = vpop.f32.mrf.mxu0  ;;  %v227_v50 = vpop.f32.mrf.mxu1 }
 0x105   :  { %346 = vst [vmem:[#allocation8] sm:$0xff] %v330_v45  ;;  %354 = vst [vmem:[#allocation8 + $0x40] sm:$0xff] %v338_v46  ;;  %v333_v51 = vmax.f32 %v317_v47, 0.0  ;;  %v341_v52 = vmax.f32 %v325_v48, 0.0  ;;  %v316_v53 = vadd.f32 %v380_v32, %v187_v49  ;;  %v324_v54 = vadd.f32 %v380_v32, %v227_v50 }
 0x106   :  { %v453_v55 = vpop.f32.mrf.mxu0  ;;  %v465_v56 = vpop.f32.mrf.mxu1 }
 0x107   :  { %349 = vst [vmem:[#allocation8 + $0x18] sm:$0xff] %v333_v51  ;;  %357 = vst [vmem:[#allocation8 + $0x58] sm:$0xff] %v341_v52  ;;  %v332_v57 = vmax.f32 %v316_v53, 0.0  ;;  %v340_v58 = vmax.f32 %v324_v54, 0.0  ;;  %v319_v59 = vadd.f32 %v453_v55, %v380_v32  ;;  %v327_v60 = vadd.f32 %v465_v56, %v380_v32 }
 0x108   :  { %v197_v61 = vpop.f32.mrf.mxu0  ;;  %v237_v62 = vpop.f32.mrf.mxu1 }
 0x109   :  { %348 = vst [vmem:[#allocation8 + $0x10] sm:$0xff] %v332_v57  ;;  %356 = vst [vmem:[#allocation8 + $0x50] sm:$0xff] %v340_v58  ;;  %v335_v63 = vmax.f32 %v319_v59, 0.0  ;;  %v343_v0 = vmax.f32 %v327_v60, 0.0  ;;  %v318_v1 = vadd.f32 %v380_v32, %v197_v61  ;;  %v326_v2 = vadd.f32 %v380_v32, %v237_v62 }
 0x10a   :  { %v456_v3 = vpop.f32.mrf.mxu0  ;;  %v468_v4 = vpop.f32.mrf.mxu1 }
 0x10b   :  { %351 = vst [vmem:[#allocation8 + $0x28] sm:$0xff] %v335_v63  ;;  %359 = vst [vmem:[#allocation8 + $0x68] sm:$0xff] %v343_v0  ;;  %v334_v5 = vmax.f32 %v318_v1, 0.0  ;;  %v342_v6 = vmax.f32 %v326_v2, 0.0  ;;  %v321_v7 = vadd.f32 %v456_v3, %v380_v32  ;;  %v329_v8 = vadd.f32 %v468_v4, %v380_v32 }
 0x10c   :  { %v207_v9 = vpop.f32.mrf.mxu0  ;;  %v247_v10 = vpop.f32.mrf.mxu1 }
 0x10d   :  { %350 = vst [vmem:[#allocation8 + $0x20] sm:$0xff] %v334_v5  ;;  %358 = vst [vmem:[#allocation8 + $0x60] sm:$0xff] %v342_v6  ;;  %v337_v11 = vmax.f32 %v321_v7, 0.0  ;;  %v345_v12 = vmax.f32 %v329_v8, 0.0  ;;  %v320_v13 = vadd.f32 %v380_v32, %v207_v9  ;;  %v328_v14 = vadd.f32 %v380_v32, %v247_v10 }
 0x10f   :  { %353 = vst [vmem:[#allocation8 + $0x38] sm:$0xff] %v337_v11  ;;  %361 = vst [vmem:[#allocation8 + $0x78] sm:$0xff] %v345_v12  ;;  %v336_v15 = vmax.f32 %v320_v13, 0.0  ;;  %v344_v16 = vmax.f32 %v328_v14, 0.0 }
 0x111   :  { %352 = vst [vmem:[#allocation8 + $0x30] sm:$0xff] %v336_v15  ;;  %360 = vst [vmem:[#allocation8 + $0x70] sm:$0xff] %v344_v16 }
 0x112   :  { %557 = shalt.err (!%p554_p0)
}
 0x113   :  { %373 = dma.vmem_to_hbm [thread:$0]  %s368_s24, 2048, %s621_s3, [#allocation5], %s573_s15, %s573_s15, %s574_s16  }
 0x114   :  { %570 = dma.done.wait [#allocation5], 2048  }
 0x115   :  { %571 = vsyncadd [#allocation5], 4294965248 }
 0x116   :  { %377 = vsyncpa [#allocation4], 1 }
 0x117   :  { %378 = vsyncpa [#allocation7], 1 }
 0x118   :  { %379 = vsyncpa [#allocation5], 1 }

</bundles_post_ra>
